<compile_context>
chip_gen: v5e
topology: v5e:2x2
jax: 0.10.0
libtpu: 0.0.40
codegen_flags: <defaults>
</compile_context>

<pallas_src>
import math
from functools import partial

import jax
import jax.numpy as jnp
from jax.experimental import pallas as pl
from jax.experimental.pallas import tpu as pltpu


def _round_up(x, m):
    return ((x + m - 1) // m) * m


# ---------------------------------------------------------------------------
# Fused GINConv layer kernel: K-tiled sum aggregation + 2-layer MLP epilogue.
# ---------------------------------------------------------------------------
def gin_layer_kernel(x_src_ref, x_dst_ref, adj_ref, w1_ref, b1_ref, w2_ref,
                     b2_ref, out_ref, acc_ref, *, eps, apply_outer_relu):
    k = pl.program_id(1)

    # Seed the accumulator with the (1 + eps) * h_dst self term.
    @pl.when(k == 0)
    def _():
        acc_ref[...] = (1.0 + eps) * x_dst_ref[...]

    # Partial neighborhood sum for this (dst tile, src block). adj is 0/1 kept
    # bf16 in HBM (halves the dominant stream); widen to f32 in VMEM so the
    # MXU accumulation stays exact f32.
    acc_ref[...] += jnp.dot(adj_ref[...].astype(jnp.float32), x_src_ref[...],
                            preferred_element_type=jnp.float32)

    # After the last src block: apply_func MLP (Linear1 -> ReLU -> Linear2),
    # optional outer ReLU (ApplyNodeFunc), one lane-dense store.
    @pl.when(k == pl.num_programs(1) - 1)
    def _():
        agg = acc_ref[...]
        h = jnp.dot(agg, w1_ref[...], preferred_element_type=jnp.float32)
        h = jnp.maximum(h + b1_ref[...], 0.0)
        o = jnp.dot(h, w2_ref[...], preferred_element_type=jnp.float32)
        o = o + b2_ref[...]
        if apply_outer_relu:
            o = jnp.maximum(o, 0.0)
        out_ref[...] = o.astype(out_ref.dtype)


# ---------------------------------------------------------------------------
# Per-generation VMEM budget and tile selection.
# ---------------------------------------------------------------------------
def _vmem_limit_bytes():
    cap = 64 * 1024 * 1024          # conservative default: v7x per-TC VMEM
    try:
        info = pltpu.get_tpu_info()
        cap = int(getattr(info, "vmem_capacity_bytes", cap))
    except Exception:
        pass
    # ~25% headroom for Mosaic internal scratch / MLP intermediates:
    # ~48 MiB usable on v7x, ~96 MiB on v5e/v6e (128 MiB parts).
    return (cap * 3) // 4


def _choose_tiling(n, d_pad, vmem_limit_bytes):
    """Pick (n_pad, tile_n dst rows, tile_k src cols).

    Budget counts every resident per-step buffer: double-buffered bf16 adj
    slab, double-buffered f32 src/dst feature blocks, f32 accumulator scratch
    and the double-buffered output block (weights are tiny at 128-padded dims).
    """
    budget = int(vmem_limit_bytes * 0.6)
    n_pad_min = _round_up(n, 128)            # lane-dense adjacency columns
    if n_pad_min <= 1024:
        # Small graph: single src block per dst tile.
        tile_n = min(n_pad_min, 512)
        n_pad = _round_up(n_pad_min, tile_n)
        return n_pad, tile_n, n_pad
    for tile_n in (512, 256, 128, 64, 32, 16):
        for tile_k in (2048, 1024, 512, 256, 128):
            resident = (2 * tile_n * tile_k * 2          # adj (bf16), x2 buffers
                        + 2 * tile_k * d_pad * 4         # x src block, x2 buffers
                        + 3 * tile_n * d_pad * 4         # x dst block (x2) + acc
                        + 2 * tile_n * d_pad * 4)        # out block, x2 buffers
            if resident <= budget:
                n_pad = _round_up(n, max(tile_n, tile_k))
                return n_pad, tile_n, tile_k
    return _round_up(n, 128), 16, 128


# ---------------------------------------------------------------------------
# One GINConv layer (sum aggregator + 2-layer MLP apply_func) as a pallas_call.
# ---------------------------------------------------------------------------
def gin_conv(x, adj, params, *, eps, apply_outer_relu, tile_n, tile_k,
             vmem_limit):
    n_pad, d_in_pad = x.shape
    w1, b1, w2, b2 = params                     # weights pre-transposed [in, out]
    d_hid_pad = w1.shape[1]
    d_out_pad = w2.shape[1]
    assert w1.shape[0] == d_in_pad
    assert n_pad % tile_n == 0 and n_pad % tile_k == 0

    kernel = partial(gin_layer_kernel, eps=float(eps),
                     apply_outer_relu=apply_outer_relu)

    return pl.pallas_call(
        kernel,
        out_shape=jax.ShapeDtypeStruct((n_pad, d_out_pad), jnp.float32),
        grid=(n_pad // tile_n, n_pad // tile_k),
        in_specs=[
            pl.BlockSpec((tile_k, d_in_pad), lambda i, k: (k, 0)),    # x, src block
            pl.BlockSpec((tile_n, d_in_pad), lambda i, k: (i, 0)),    # x, dst tile
            pl.BlockSpec((tile_n, tile_k), lambda i, k: (i, k)),      # adj slab (bf16)
            # TODO(synk): weights/biases are grid-invariant; pl.Buffered(1) would
            # drop their second VMEM buffer (negligible at 128-padded dims here).
            pl.BlockSpec((d_in_pad, d_hid_pad), lambda i, k: (0, 0)), # W1 [in, hid]
            pl.BlockSpec((1, d_hid_pad), lambda i, k: (0, 0)),        # b1
            pl.BlockSpec((d_hid_pad, d_out_pad), lambda i, k: (0, 0)),# W2 [hid, out]
            pl.BlockSpec((1, d_out_pad), lambda i, k: (0, 0)),        # b2
        ],
        out_specs=pl.BlockSpec((tile_n, d_out_pad), lambda i, k: (i, 0)),
        scratch_shapes=[pltpu.VMEM((tile_n, d_in_pad), jnp.float32)],
        compiler_params=pltpu.CompilerParams(
            dimension_semantics=("parallel", "arbitrary"),
            vmem_limit_bytes=int(vmem_limit)),
    )(x, x, adj, w1, b1, w2, b2)


# ---------------------------------------------------------------------------
# Parameter init (PyTorch nn.Linear defaults), lane-padded to multiples of 128.
# ---------------------------------------------------------------------------
def init_linear(key, fan_in, fan_out):
    """nn.Linear default init; weight stored pre-transposed as [fan_in, fan_out]."""
    kw, kb = jax.random.split(key)
    bound = 1.0 / math.sqrt(fan_in)
    w = jax.random.uniform(kw, (fan_in, fan_out), jnp.float32, -bound, bound)
    b = jax.random.uniform(kb, (1, fan_out), jnp.float32, -bound, bound)
    return w, b


def init_gin_layer_params(key, in_dim, hidden_dim, out_dim):
    """One GINConv MLP(2, in, hid, out). Returns (lane-padded params, raw params).

    Padded rows/cols are exactly zero, so padded feature columns stay zero
    through every layer and the unpadded slice matches the reference exactly.
    """
    k1, k2 = jax.random.split(key)
    w1, b1 = init_linear(k1, in_dim, hidden_dim)
    w2, b2 = init_linear(k2, hidden_dim, out_dim)
    in_p = _round_up(in_dim, 128)
    hid_p = _round_up(hidden_dim, 128)
    out_p = _round_up(out_dim, 128)
    w1p = jnp.zeros((in_p, hid_p), jnp.float32).at[:in_dim, :hidden_dim].set(w1)
    b1p = jnp.zeros((1, hid_p), jnp.float32).at[:, :hidden_dim].set(b1)
    w2p = jnp.zeros((hid_p, out_p), jnp.float32).at[:hidden_dim, :out_dim].set(w2)
    b2p = jnp.zeros((1, out_p), jnp.float32).at[:, :out_dim].set(b2)
    return (w1p, b1p, w2p, b2p), (w1, b1, w2, b2)


# ---------------------------------------------------------------------------
# Full GIN forward (eval mode: dropout = identity, head = nn.Identity).
# ---------------------------------------------------------------------------
def gin_forward(x, adj, layer_params, layer_cfgs, out_dim):
    n, d_in = x.shape
    d_in_pad = layer_params[0][0].shape[0]
    d_pad_max = max(max(p[0].shape[0], p[0].shape[1], p[2].shape[1])
                    for p in layer_params)

    vmem_limit = _vmem_limit_bytes()
    n_pad, tile_n, tile_k = _choose_tiling(n, d_pad_max, vmem_limit)

    # Zero-pad features / adjacency once; adjacency streamed as bf16 (exact 0/1).
    h = jnp.zeros((n_pad, d_in_pad), jnp.float32).at[:n, :d_in].set(x)
    adj_p = jnp.zeros((n_pad, n_pad), jnp.bfloat16).at[:n, :n].set(
        adj.astype(jnp.bfloat16))

    for params, cfg in zip(layer_params, layer_cfgs):
        h = gin_conv(h, adj_p, params, tile_n=tile_n, tile_k=tile_k,
                     vmem_limit=vmem_limit, **cfg)
    return h[:n, :out_dim]


def gin_reference(x, adj, raw_layer_params, layer_cfgs):
    """Pure-JAX reference of the eval-mode forward (validation only)."""
    h = x
    for (w1, b1, w2, b2), cfg in zip(raw_layer_params, layer_cfgs):
        agg = adj @ h + (1.0 + cfg["eps"]) * h
        t = jnp.maximum(agg @ w1 + b1, 0.0)
        o = t @ w2 + b2
        h = jnp.maximum(o, 0.0) if cfg["apply_outer_relu"] else o
    return h


if __name__ == "__main__":
    # GIN(in_dim=16, num_hidden=32, out_dim=8, num_layers=2, dropout=0.0,
    #     activation='relu', residual=False, norm=None, encoding=False,
    #     learn_eps=False, aggr='sum') in eval mode.
    N, IN_DIM, NUM_HIDDEN, OUT_DIM = 32, 16, 32, 8

    key = jax.random.PRNGKey(0)
    kx, kp0, kp1 = jax.random.split(key, 3)

    x = jax.random.normal(kx, (N, IN_DIM), dtype=jnp.float32)

    # Deterministic ring graph: edges (v-1)->v and (v+1)->v (adj[v,u]=1 iff u->v).
    idx = jnp.arange(N)
    adj = jnp.zeros((N, N), dtype=jnp.float32)
    adj = adj.at[idx, (idx - 1) % N].set(1.0)
    adj = adj.at[idx, (idx + 1) % N].set(1.0)

    # layer 0: GINConv(in, hid), apply_func = ApplyNodeFunc(MLP(2, in, hid, hid))
    p0, raw0 = init_gin_layer_params(kp0, IN_DIM, NUM_HIDDEN, NUM_HIDDEN)
    # layer 1 (last): GINConv(hid, out), apply_func = MLP(2, hid, hid, out)
    p1, raw1 = init_gin_layer_params(kp1, NUM_HIDDEN, NUM_HIDDEN, OUT_DIM)
    layer_cfgs = [
        dict(eps=0.0, apply_outer_relu=True),    # hidden layer: ApplyNodeFunc ReLU
        dict(eps=0.0, apply_outer_relu=False),   # last layer: plain MLP output
    ]

    out = gin_forward(x, adj, [p0, p1], layer_cfgs, out_dim=OUT_DIM)
    jax.block_until_ready(out)

    ref = gin_reference(x, adj, [raw0, raw1], layer_cfgs)
    assert out.shape == (N, OUT_DIM)
    assert bool(jnp.all(jnp.isfinite(out)))
    assert bool(jnp.allclose(out, ref, rtol=5e-2, atol=5e-2))
    # TODO(synk): training-mode dropout, batchnorm/layernorm/graphnorm branches,
    # learn_eps, residual connections, and 'max'/'mean' aggregators are identity
    # or unused at this eval configuration and are not lowered.
    # TODO(synk): for layers with d_in > d_hid, Linear1 could be hoisted before
    # aggregation (stream y = x @ W1 instead of x); not beneficial at 16->32 here.
    print("KERNEL_OK")
</pallas_src>

<mosaic_0001>
module attributes {stable_mosaic.version = 11 : i64} {
  func.func @gin_layer_kernel(%arg0: i32, %arg1: i32, %arg2: memref<128x128xf32, #tpu.memory_space<vmem>>, %arg3: memref<128x128xf32, #tpu.memory_space<vmem>>, %arg4: memref<128x128xbf16, #tpu.memory_space<vmem>>, %arg5: memref<128x128xf32, #tpu.memory_space<vmem>>, %arg6: memref<1x128xf32, #tpu.memory_space<vmem>>, %arg7: memref<128x128xf32, #tpu.memory_space<vmem>>, %arg8: memref<1x128xf32, #tpu.memory_space<vmem>>, %arg9: memref<128x128xf32, #tpu.memory_space<vmem>>, %arg10: memref<128x128xf32, #tpu.memory_space<vmem>>) attributes {dimension_semantics = [#tpu.dimension_semantics<parallel>, #tpu.dimension_semantics<arbitrary>], iteration_bounds = array<i64: 1, 1>, scalar_prefetch = 0 : i64, scratch_operands = 1 : i64, tpu.core_type = #tpu.core_type<tc>, window_params = [{transform_indices = @transform_0, window_bounds = array<i64: 128, 128>}, {transform_indices = @transform_1, window_bounds = array<i64: 128, 128>}, {transform_indices = @transform_2, window_bounds = array<i64: 128, 128>}, {pipeline_mode = #tpu.pipeline_mode<synchronous>, transform_indices = @transform_3, window_bounds = array<i64: 128, 128>}, {pipeline_mode = #tpu.pipeline_mode<synchronous>, transform_indices = @transform_4, window_bounds = array<i64: 1, 128>}, {pipeline_mode = #tpu.pipeline_mode<synchronous>, transform_indices = @transform_5, window_bounds = array<i64: 128, 128>}, {pipeline_mode = #tpu.pipeline_mode<synchronous>, transform_indices = @transform_6, window_bounds = array<i64: 1, 128>}, {transform_indices = @transform_7, window_bounds = array<i64: 128, 128>}]} {
    %c0_i32 = arith.constant 0 : i32
    %0 = arith.cmpi eq, %arg1, %c0_i32 : i32
    %1 = arith.extui %0 : i1 to i32
    %c0_i32_0 = arith.constant 0 : i32
    %2 = arith.cmpi ne, %1, %c0_i32_0 : i32
    scf.if %2 {
      %c0_10 = arith.constant 0 : index
      %c0_11 = arith.constant 0 : index
      %13 = vector.load %arg3[%c0_10, %c0_11] : memref<128x128xf32, #tpu.memory_space<vmem>>, vector<128x128xf32>
      %cst_12 = arith.constant 1.000000e+00 : f32
      %14 = vector.broadcast %cst_12 : f32 to vector<128x128xf32>
      %15 = arith.mulf %14, %13 : vector<128x128xf32>
      %c0_13 = arith.constant 0 : index
      %c0_14 = arith.constant 0 : index
      %16 = vector.load %arg10[%c0_13, %c0_14] : memref<128x128xf32, #tpu.memory_space<vmem>>, vector<128x128xf32>
      tpu.vector_store %arg10[%c0_13, %c0_14], %15 {strides = array<i32>} : memref<128x128xf32, #tpu.memory_space<vmem>>, vector<128x128xf32>,
    } else {
    }
    %c0 = arith.constant 0 : index
    %c0_1 = arith.constant 0 : index
    %3 = vector.load %arg10[%c0, %c0_1] : memref<128x128xf32, #tpu.memory_space<vmem>>, vector<128x128xf32>
    %c0_2 = arith.constant 0 : index
    %c0_3 = arith.constant 0 : index
    %4 = vector.load %arg4[%c0_2, %c0_3] : memref<128x128xbf16, #tpu.memory_space<vmem>>, vector<128x128xbf16>
    %5 = arith.extf %4 : vector<128x128xbf16> to vector<128x128xf32>
    %c0_4 = arith.constant 0 : index
    %c0_5 = arith.constant 0 : index
    %6 = vector.load %arg2[%c0_4, %c0_5] : memref<128x128xf32, #tpu.memory_space<vmem>>, vector<128x128xf32>
    %cst = arith.constant dense<0.000000e+00> : vector<128x128xf32>
    %7 = tpu.matmul %5, %6, %cst {dimension_numbers = #tpu.dot_dimension_numbers<[1], [0], [0], [1], [0, 0, 1, 1], [], []>} : vector<128x128xf32>, vector<128x128xf32>, vector<128x128xf32> -> vector<128x128xf32>
    %8 = arith.addf %3, %7 : vector<128x128xf32>
    %c0_6 = arith.constant 0 : index
    %c0_7 = arith.constant 0 : index
    %9 = vector.load %arg10[%c0_6, %c0_7] : memref<128x128xf32, #tpu.memory_space<vmem>>, vector<128x128xf32>
    tpu.vector_store %arg10[%c0_6, %c0_7], %8 {strides = array<i32>} : memref<128x128xf32, #tpu.memory_space<vmem>>, vector<128x128xf32>,
    %c0_i32_8 = arith.constant 0 : i32
    %10 = arith.cmpi eq, %arg1, %c0_i32_8 : i32
    %11 = arith.extui %10 : i1 to i32
    %c0_i32_9 = arith.constant 0 : i32
    %12 = arith.cmpi ne, %11, %c0_i32_9 : i32
    scf.if %12 {
      %c0_10 = arith.constant 0 : index
      %c0_11 = arith.constant 0 : index
      %13 = vector.load %arg10[%c0_10, %c0_11] : memref<128x128xf32, #tpu.memory_space<vmem>>, vector<128x128xf32>
      %c0_12 = arith.constant 0 : index
      %c0_13 = arith.constant 0 : index
      %14 = vector.load %arg5[%c0_12, %c0_13] : memref<128x128xf32, #tpu.memory_space<vmem>>, vector<128x128xf32>
      %cst_14 = arith.constant dense<0.000000e+00> : vector<128x128xf32>
      %15 = tpu.matmul %13, %14, %cst_14 {dimension_numbers = #tpu.dot_dimension_numbers<[1], [0], [0], [1], [0, 0, 1, 1], [], []>} : vector<128x128xf32>, vector<128x128xf32>, vector<128x128xf32> -> vector<128x128xf32>
      %c0_15 = arith.constant 0 : index
      %c0_16 = arith.constant 0 : index
      %16 = vector.load %arg6[%c0_15, %c0_16] : memref<1x128xf32, #tpu.memory_space<vmem>>, vector<1x128xf32>
      %17 = vector.broadcast %16 : vector<1x128xf32> to vector<128x128xf32>
      %18 = arith.addf %15, %17 : vector<128x128xf32>
      %cst_17 = arith.constant 0.000000e+00 : f32
      %19 = vector.broadcast %cst_17 : f32 to vector<128x128xf32>
      %20 = arith.maximumf %18, %19 : vector<128x128xf32>
      %c0_18 = arith.constant 0 : index
      %c0_19 = arith.constant 0 : index
      %21 = vector.load %arg7[%c0_18, %c0_19] : memref<128x128xf32, #tpu.memory_space<vmem>>, vector<128x128xf32>
      %cst_20 = arith.constant dense<0.000000e+00> : vector<128x128xf32>
      %22 = tpu.matmul %20, %21, %cst_20 {dimension_numbers = #tpu.dot_dimension_numbers<[1], [0], [0], [1], [0, 0, 1, 1], [], []>} : vector<128x128xf32>, vector<128x128xf32>, vector<128x128xf32> -> vector<128x128xf32>
      %c0_21 = arith.constant 0 : index
      %c0_22 = arith.constant 0 : index
      %23 = vector.load %arg8[%c0_21, %c0_22] : memref<1x128xf32, #tpu.memory_space<vmem>>, vector<1x128xf32>
      %24 = vector.broadcast %23 : vector<1x128xf32> to vector<128x128xf32>
      %25 = arith.addf %22, %24 : vector<128x128xf32>
      %cst_23 = arith.constant 0.000000e+00 : f32
      %26 = vector.broadcast %cst_23 : f32 to vector<128x128xf32>
      %27 = arith.maximumf %25, %26 : vector<128x128xf32>
      %c0_24 = arith.constant 0 : index
      %c0_25 = arith.constant 0 : index
      %28 = vector.load %arg9[%c0_24, %c0_25] : memref<128x128xf32, #tpu.memory_space<vmem>>, vector<128x128xf32>
      tpu.vector_store %arg9[%c0_24, %c0_25], %27 {strides = array<i32>} : memref<128x128xf32, #tpu.memory_space<vmem>>, vector<128x128xf32>,
    } else {
    }
    return
  }
  func.func @transform_0(%arg0: i32, %arg1: i32) -> (i32, i32) {
    %c0_i32 = arith.constant 0 : i32
    %c0_i32_0 = arith.constant 0 : i32
    return %arg1, %c0_i32 : i32, i32
  }
  func.func @transform_1(%arg0: i32, %arg1: i32) -> (i32, i32) {
    %c0_i32 = arith.constant 0 : i32
    %c0_i32_0 = arith.constant 0 : i32
    return %arg0, %c0_i32 : i32, i32
  }
  func.func @transform_2(%arg0: i32, %arg1: i32) -> (i32, i32) {
    %c0_i32 = arith.constant 0 : i32
    return %arg0, %arg1 : i32, i32
  }
  func.func @transform_3(%arg0: i32, %arg1: i32) -> (i32, i32) {
    %c0_i32 = arith.constant 0 : i32
    %c0_i32_0 = arith.constant 0 : i32
    %c0_i32_1 = arith.constant 0 : i32
    return %c0_i32, %c0_i32_0 : i32, i32
  }
  func.func @transform_4(%arg0: i32, %arg1: i32) -> (i32, i32) {
    %c0_i32 = arith.constant 0 : i32
    %c0_i32_0 = arith.constant 0 : i32
    %c0_i32_1 = arith.constant 0 : i32
    return %c0_i32, %c0_i32_0 : i32, i32
  }
  func.func @transform_5(%arg0: i32, %arg1: i32) -> (i32, i32) {
    %c0_i32 = arith.constant 0 : i32
    %c0_i32_0 = arith.constant 0 : i32
    %c0_i32_1 = arith.constant 0 : i32
    return %c0_i32, %c0_i32_0 : i32, i32
  }
  func.func @transform_6(%arg0: i32, %arg1: i32) -> (i32, i32) {
    %c0_i32 = arith.constant 0 : i32
    %c0_i32_0 = arith.constant 0 : i32
    %c0_i32_1 = arith.constant 0 : i32
    return %c0_i32, %c0_i32_0 : i32, i32
  }
  func.func @transform_7(%arg0: i32, %arg1: i32) -> (i32, i32) {
    %c0_i32 = arith.constant 0 : i32
    %c0_i32_0 = arith.constant 0 : i32
    return %arg0, %c0_i32 : i32, i32
  }
}

</mosaic_0001>

<bundles_post_ra>
// kernel: tpu_custom_call.1
= control target key start
LH: loop header
LB: loop body
LE: loop exit
PB: predicated region body
PF: predicated region fallthrough
CT: control target
= control target key end

     0   :  { %12 = vsyncpa [#allocation4], 0  ;;  %s918_s0 = inlined_call_operand.hbm [shape: f32[128,128], index: 0, kind: input, shape index: {}]   ;;  %s919_s1 = inlined_call_operand.hbm [shape: f32[128,128], index: 1, kind: input, shape index: {}]   ;;  %s920_s2 = inlined_call_operand.hbm [shape: bf16[128,128], index: 2, kind: input, shape index: {}]   ;;  %s921_s3 = inlined_call_operand.hbm [shape: f32[128,128], index: 3, kind: input, shape index: {}]   ;;  %s922_s4 = inlined_call_operand.vmem [shape: f32[1,128], index: 4, kind: input, shape index: {}]   ;;  %s923_s5 = inlined_call_operand.hbm [shape: f32[128,128], index: 5, kind: input, shape index: {}]   ;;  %s924_s6 = inlined_call_operand.vmem [shape: f32[1,128], index: 6, kind: input, shape index: {}]   ;;  %s925_s7 = inlined_call_operand.hbm [shape: f32[128,128], index: 7, kind: output, shape index: {}]  }
   0x1   :  { %13 = vsyncpa [#allocation7], 0 }
   0x2   :  { %14 = vsyncpa [#allocation10], 0 }
   0x3   :  { %15 = vsyncpa [#allocation5], 0  ;;  %s33_s26 = sshll.u32 %s919_s1, 4  ;;  %s811_s27 = smov [#allocation6]   ;;  %s34_s26 = int_to_ptr.hbm [resolvable:$true] %s33_s26 }
   0x4   :  { %s35_s28 = sshll.u32 %s811_s27, 4  ;;  %s59_s8 = sshll.u32 %s921_s3, 4  ;;  %s36_s28 = int_to_ptr.vmem [resolvable:$true] %s35_s28  ;;  %s60_s8 = int_to_ptr.hbm [resolvable:$true] %s59_s8 }
   0x5   :  { %s812_s9 = smov 128   ;;  %s813_s10 = smov 8  }
   0x6   :  { %41 = dma.hbm_to_vmem [thread:$0]  %s34_s26, 2048, %s36_s28, [#allocation7], %s812_s9, %s812_s9, %s813_s10  }
   0x7   :  { %s814_s11 = smov [#allocation9]   ;;  %s20_s1 = sshll.u32 %s918_s0, 4  ;;  %s21_s1 = int_to_ptr.hbm [resolvable:$true] %s20_s1 }
   0x8   :  { %s61_s12 = sshll.u32 %s814_s11, 4  ;;  %s46_s16 = sshll.u32 %s920_s2, 4  ;;  %s62_s12 = int_to_ptr.vmem [resolvable:$true] %s61_s12  ;;  %s47_s16 = int_to_ptr.hbm [resolvable:$true] %s46_s16 }
   0x9   :  { %67 = dma.hbm_to_vmem [thread:$0]  %s60_s8, 2048, %s62_s12, [#allocation10], %s812_s9, %s812_s9, %s813_s10  }
   0xa   :  { %s815_s17 = smov [#allocation3]   ;;  %s816_s19 = smov [#allocation8]  }
   0xb   :  { %s22_s18 = sshll.u32 %s815_s17, 4  ;;  %s48_s0 = sshll.u32 %s816_s19, 4  ;;  %s23_s18 = int_to_ptr.vmem [resolvable:$true] %s22_s18  ;;  %s49_s0 = int_to_ptr.vmem [resolvable:$true] %s48_s0 }
   0xc   :  { %28 = dma.hbm_to_vmem [thread:$0]  %s21_s1, 2048, %s23_s18, [#allocation4], %s812_s9, %s812_s9, %s813_s10  }
   0xd   :  { %s817_s20 = smov 64   ;;  %s818_s21 = smov 4  }
   0xe   :  { %54 = dma.hbm_to_vmem [thread:$0]  %s47_s16, 1024, %s49_s0, [#allocation7], %s817_s20, %s817_s20, %s818_s21  }
   0xf   :  { %s74_s24 = sshll.u32 %s923_s5, 4  ;;  %s819_s2 = smov [#allocation11]   ;;  %s75_s24 = int_to_ptr.hbm [resolvable:$true] %s74_s24 }
  0x10   :  { %s76_s25 = sshll.u32 %s819_s2, 4  ;;  %s77_s25 = int_to_ptr.vmem [resolvable:$true] %s76_s25 }
  0x11   :  { %82 = dma.hbm_to_vmem [thread:$0]  %s75_s24, 2048, %s77_s25, [#allocation10], %s812_s9, %s812_s9, %s813_s10  }
  0x12   :  { %803 = dma.done.wait [#allocation4], 2048  }
  0x13   :  { %804 = vsyncadd [#allocation4], 4294965248 }
  0x14   :  { %805 = dma.done.wait [#allocation7], 3072  }
  0x15   :  { %806 = vsyncadd [#allocation7], 4294964224 }
  0x16   :  { %807 = dma.done.wait [#allocation10], 4096  }
  0x17   :  { %808 = vsyncadd [#allocation10], 4294963200  ;;  %v204_v0 = vld [vmem:[#allocation3 + $0x78] sm:$0xff]  ;;  %v203_v1 = vld [vmem:[#allocation3 + $0x70] sm:$0xff]  ;;  %s545_s8 = sshll.u32 %s925_s7, 4  ;;  %s546_s8 = int_to_ptr.hbm [resolvable:$true] %s545_s8 }
  0x18   :  { %205 = vmatpush.msra.mxu0 %v204_v0  ;;  %599 = vmatpush.msra.mxu3 %v204_v0  ;;  %v202_v2 = vld [vmem:[#allocation3 + $0x68] sm:$0xff]  ;;  %v201_v3 = vld [vmem:[#allocation3 + $0x60] sm:$0xff]  ;;  %v200_v4 = vld [vmem:[#allocation3 + $0x58] sm:$0xff] }
  0x19   :  { %v199_v5 = vld [vmem:[#allocation3 + $0x50] sm:$0xff]  ;;  %v198_v6 = vld [vmem:[#allocation3 + $0x48] sm:$0xff]  ;;  %v197_v7 = vld [vmem:[#allocation3 + $0x40] sm:$0xff] }
  0x1a   :  { %206 = vmatpush.msra.mxu0 %v203_v1  ;;  %600 = vmatpush.msra.mxu3 %v203_v1  ;;  %v196_v8 = vld [vmem:[#allocation3 + $0x38] sm:$0xff]  ;;  %v195_v9 = vld [vmem:[#allocation3 + $0x30] sm:$0xff]  ;;  %v194_v10 = vld [vmem:[#allocation3 + $0x28] sm:$0xff] }
  0x1b   :  { %v193_v11 = vld [vmem:[#allocation3 + $0x20] sm:$0xff]  ;;  %v192_v12 = vld [vmem:[#allocation3 + $0x18] sm:$0xff]  ;;  %v191_v13 = vld [vmem:[#allocation3 + $0x10] sm:$0xff] }
  0x1c   :  { %207 = vmatpush.msra.mxu0 %v202_v2  ;;  %601 = vmatpush.msra.mxu3 %v202_v2  ;;  %v561_v14 = vld [vmem:[#allocation8] sm:$0xff]   ;;  %v190_v15 = vld [vmem:[#allocation3 + $0x8] sm:$0xff]  ;;  %v597_v21 = vld [vmem:[#allocation8 + $0x30] sm:$0xff]  }
  0x1d   :  { %v189_v16 = vld [vmem:[#allocation3] sm:$0xff]  ;;  %v562_v17 = vunpack.c.l.bf16 %v561_v14  ;;  %v563_v18 = vunpack.c.h.bf16 %v561_v14  ;;  %v592_v19 = vld [vmem:[#allocation8 + $0x8] sm:$0xff]   ;;  %v586_v22 = vunpack.c.l.bf16 %v597_v21  ;;  %v587_v24 = vunpack.c.h.bf16 %v597_v21  ;;  %v593_v25 = vld [vmem:[#allocation8 + $0x10] sm:$0xff]  }
  0x1e   :  { %208 = vmatpush.msra.mxu0 %v201_v3  ;;  %602 = vmatpush.msra.mxu3 %v201_v3  ;;  %v566_v20 = vunpack.c.l.bf16 %v592_v19  ;;  %v567_v23 = vunpack.c.h.bf16 %v592_v19  ;;  %v570_v26 = vunpack.c.l.bf16 %v593_v25  ;;  %v598_v27 = vld [vmem:[#allocation8 + $0x38] sm:$0xff]   ;;  %v571_v29 = vunpack.c.h.bf16 %v593_v25  ;;  %v335_v35 = vld [vmem:[#allocation9 + $0x70] sm:$0xff]  ;;  %v595_v36 = vld [vmem:[#allocation8 + $0x20] sm:$0xff]  }
  0x1f   :  { %v590_v28 = vunpack.c.l.bf16 %v598_v27  ;;  %v591_v30 = vunpack.c.h.bf16 %v598_v27  ;;  %v594_v31 = vld [vmem:[#allocation8 + $0x18] sm:$0xff]   ;;  %v334_v37 = vld [vmem:[#allocation9 + $0x68] sm:$0xff]  ;;  %v578_v38 = vunpack.c.l.bf16 %v595_v36  ;;  %v333_v39 = vld [vmem:[#allocation9 + $0x60] sm:$0xff]  ;;  %v579_v43 = vunpack.c.h.bf16 %v595_v36 }
  0x20   :  { %209 = vmatpush.msra.mxu0 %v200_v4  ;;  %603 = vmatpush.msra.mxu3 %v200_v4  ;;  %v574_v32 = vunpack.c.l.bf16 %v594_v31  ;;  %v575_v33 = vunpack.c.h.bf16 %v594_v31  ;;  %v336_v34 = vld [vmem:[#allocation9 + $0x78] sm:$0xff]  ;;  %v331_v41 = vld [vmem:[#allocation9 + $0x50] sm:$0xff]  ;;  %v330_v42 = vld [vmem:[#allocation9 + $0x48] sm:$0xff] }
  0x21   :  { %341 = vmatpush.msra.mxu1 %v336_v34  ;;  %v332_v40 = vld [vmem:[#allocation9 + $0x58] sm:$0xff]  ;;  %v329_v44 = vld [vmem:[#allocation9 + $0x40] sm:$0xff]  ;;  %v327_v46 = vld [vmem:[#allocation9 + $0x30] sm:$0xff] }
  0x22   :  { %210 = vmatpush.msra.mxu0 %v199_v5  ;;  %604 = vmatpush.msra.mxu3 %v199_v5  ;;  %v328_v45 = vld [vmem:[#allocation9 + $0x38] sm:$0xff]  ;;  %v596_v47 = vld [vmem:[#allocation8 + $0x28] sm:$0xff]   ;;  %v325_v50 = vld [vmem:[#allocation9 + $0x20] sm:$0xff] }
  0x23   :  { %342 = vmatpush.msra.mxu1 %v335_v35  ;;  %v326_v48 = vld [vmem:[#allocation9 + $0x28] sm:$0xff]  ;;  %v582_v49 = vunpack.c.l.bf16 %v596_v47  ;;  %v324_v51 = vld [vmem:[#allocation9 + $0x18] sm:$0xff]  ;;  %v323_v52 = vld [vmem:[#allocation9 + $0x10] sm:$0xff]  ;;  %v583_v53 = vunpack.c.h.bf16 %v596_v47 }
  0x24   :  { %211 = vmatpush.msra.mxu0 %v198_v6  ;;  %605 = vmatpush.msra.mxu3 %v198_v6  ;;  %v322_v54 = vld [vmem:[#allocation9 + $0x8] sm:$0xff]  ;;  %v321_v55 = vld [vmem:[#allocation9] sm:$0xff]  ;;  %v111_v62 = vld [vmem:[#allocation6 + $0x10] sm:$0xff] }
  0x25   :  { %343 = vmatpush.msra.mxu1 %v334_v37  ;;  %v109_v56 = vld [vmem:[#allocation6] sm:$0xff]  ;;  %v110_v59 = vld [vmem:[#allocation6 + $0x8] sm:$0xff]  ;;  %v112_v1 = vld [vmem:[#allocation6 + $0x18] sm:$0xff] }
  0x26   :  { %212 = vmatpush.msra.mxu0 %v197_v7  ;;  %606 = vmatpush.msra.mxu3 %v197_v7  ;;  %v121_v4 = vld [vmem:[#allocation6 + $0x60] sm:$0xff]  ;;  %v115_v19 = vld [vmem:[#allocation6 + $0x30] sm:$0xff]  ;;  %v116_v25 = vld [vmem:[#allocation6 + $0x38] sm:$0xff] }
  0x27   :  { %344 = vmatpush.msra.mxu1 %v333_v39  ;;  %v113_v7 = vld [vmem:[#allocation6 + $0x20] sm:$0xff]  ;;  %v432_v36 = vld [vmem:[#allocation11 + $0x50] sm:$0xff] }
  0x28   :  { %213 = vmatpush.msra.mxu0 %v196_v8  ;;  %607 = vmatpush.msra.mxu3 %v196_v8  ;;  %v117_v31 = vld [vmem:[#allocation6 + $0x40] sm:$0xff] }
  0x29   :  { %345 = vmatpush.msra.mxu1 %v332_v40 }
  0x2a   :  { %214 = vmatpush.msra.mxu0 %v195_v9  ;;  %608 = vmatpush.msra.mxu3 %v195_v9 }
  0x2b   :  { %346 = vmatpush.msra.mxu1 %v331_v41 }
  0x2c   :  { %215 = vmatpush.msra.mxu0 %v194_v10  ;;  %609 = vmatpush.msra.mxu3 %v194_v10  ;;  %v122_v10 = vld [vmem:[#allocation6 + $0x68] sm:$0xff] }
  0x2d   :  { %347 = vmatpush.msra.mxu1 %v330_v42 }
  0x2e   :  { %216 = vmatpush.msra.mxu0 %v193_v11  ;;  %610 = vmatpush.msra.mxu3 %v193_v11 }
  0x2f   :  { %348 = vmatpush.msra.mxu1 %v329_v44 }
  0x30   :  { %217 = vmatpush.msra.mxu0 %v192_v12  ;;  %611 = vmatpush.msra.mxu3 %v192_v12 }
  0x31   :  { %349 = vmatpush.msra.mxu1 %v328_v45 }
  0x32   :  { %218 = vmatpush.msra.mxu0 %v191_v13  ;;  %612 = vmatpush.msra.mxu3 %v191_v13  ;;  %v114_v13 = vld [vmem:[#allocation6 + $0x28] sm:$0xff] }
  0x33   :  { %350 = vmatpush.msra.mxu1 %v327_v46 }
  0x34   :  { %219 = vmatpush.msra.mxu0 %v190_v15  ;;  %613 = vmatpush.msra.mxu3 %v190_v15 }
  0x35   :  { %351 = vmatpush.msra.mxu1 %v326_v48 }
  0x36   :  { %220 = vmatpush.msra.mxu0 %v189_v16  ;;  %614 = vmatpush.msra.mxu3 %v189_v16  ;;  %v123_v16 = vld [vmem:[#allocation6 + $0x70] sm:$0xff] }
  0x37   :  { %221 = vmatmul.f32.vlgmr.msra.gmra.mxu0 %v562_v17  ;;  %257 = vmatmul.f32.vlgmr.msra.gmra.mxu3 %v586_v22  ;;  %v124_v22 = vld [vmem:[#allocation6 + $0x78] sm:$0xff] }
  0x38   :  { %615 = vmatpush.msrb.mxu3 %v336_v34  ;;  %352 = vmatpush.msra.mxu1 %v325_v50 }
  0x3a   :  { %616 = vmatpush.msrb.mxu3 %v335_v35  ;;  %353 = vmatpush.msra.mxu1 %v324_v51  ;;  %v433_v35 = vld [vmem:[#allocation11 + $0x58] sm:$0xff] }
  0x3c   :  { %617 = vmatpush.msrb.mxu3 %v334_v37  ;;  %354 = vmatpush.msra.mxu1 %v323_v52  ;;  %v431_v37 = vld [vmem:[#allocation11 + $0x48] sm:$0xff] }
  0x3e   :  { %618 = vmatpush.msrb.mxu3 %v333_v39  ;;  %355 = vmatpush.msra.mxu1 %v322_v54  ;;  %v430_v39 = vld [vmem:[#allocation11 + $0x40] sm:$0xff] }
  0x3f   :  { %224 = vmatmul.f32.gmra.mxu0 %v563_v18  ;;  %260 = vmatmul.f32.gmra.mxu3 %v587_v24 }
  0x40   :  { %619 = vmatpush.msrb.mxu3 %v332_v40  ;;  %356 = vmatpush.msra.mxu1 %v321_v55 }
  0x42   :  { %620 = vmatpush.msrb.mxu3 %v331_v41 }
  0x44   :  { %621 = vmatpush.msrb.mxu3 %v330_v42  ;;  %v429_v42 = vld [vmem:[#allocation11 + $0x38] sm:$0xff] }
  0x46   :  { %622 = vmatpush.msrb.mxu3 %v329_v44  ;;  %v427_v44 = vld [vmem:[#allocation11 + $0x28] sm:$0xff] }
  0x47   :  { %227 = vmatmul.f32.gmra.mxu0 %v566_v20  ;;  %263 = vmatmul.f32.gmra.mxu3 %v590_v28  ;;  %v437_v28 = vld [vmem:[#allocation11 + $0x78] sm:$0xff] }
  0x48   :  { %623 = vmatpush.msrb.mxu3 %v328_v45  ;;  %442 = vmatpush.msra.mxu2 %v437_v28  ;;  %v119_v45 = vld [vmem:[#allocation6 + $0x50] sm:$0xff] }
  0x4a   :  { %624 = vmatpush.msrb.mxu3 %v327_v46  ;;  %v426_v46 = vld [vmem:[#allocation11 + $0x20] sm:$0xff] }
  0x4c   :  { %625 = vmatpush.msrb.mxu3 %v326_v48 }
  0x4e   :  { %626 = vmatpush.msrb.mxu3 %v325_v50  ;;  %v120_v50 = vld [vmem:[#allocation6 + $0x58] sm:$0xff] }
  0x4f   :  { %230 = vmatmul.f32.gmra.mxu0 %v567_v23  ;;  %266 = vmatmul.f32.gmra.mxu3 %v591_v30  ;;  %v435_v30 = vld [vmem:[#allocation11 + $0x68] sm:$0xff] }
  0x50   :  { %627 = vmatpush.msrb.mxu3 %v324_v51 }
  0x52   :  { %628 = vmatpush.msrb.mxu3 %v323_v52 }
  0x54   :  { %629 = vmatpush.msrb.mxu3 %v322_v54  ;;  %v423_v54 = vld [vmem:[#allocation11 + $0x8] sm:$0xff] }
  0x56   :  { %630 = vmatpush.msrb.mxu3 %v321_v55  ;;  %v422_v55 = vld [vmem:[#allocation11] sm:$0xff] }
  0x57   :  { %233 = vmatmul.f32.gmra.mxu0 %v570_v26 }
  0x58   :  { %631 = vmatpush.msra.mxu3 %v437_v28 }
  0x5f   :  { %236 = vmatmul.f32.gmra.mxu0 %v571_v29  ;;  %v436_v29 = vld [vmem:[#allocation11 + $0x70] sm:$0xff] }
  0x60   :  { %443 = vmatpush.msra.mxu2 %v436_v29  ;;  %632 = vmatpush.msra.mxu3 %v436_v29 }
  0x62   :  { %444 = vmatpush.msra.mxu2 %v435_v30  ;;  %633 = vmatpush.msra.mxu3 %v435_v30 }
  0x67   :  { %239 = vmatmul.f32.gmra.mxu0 %v574_v32  ;;  %v434_v32 = vld [vmem:[#allocation11 + $0x60] sm:$0xff] }
  0x68   :  { %445 = vmatpush.msra.mxu2 %v434_v32  ;;  %634 = vmatpush.msra.mxu3 %v434_v32 }
  0x6a   :  { %446 = vmatpush.msra.mxu2 %v433_v35  ;;  %635 = vmatpush.msra.mxu3 %v433_v35 }
  0x6c   :  { %447 = vmatpush.msra.mxu2 %v432_v36  ;;  %636 = vmatpush.msra.mxu3 %v432_v36 }
  0x6e   :  { %448 = vmatpush.msra.mxu2 %v431_v37  ;;  %637 = vmatpush.msra.mxu3 %v431_v37 }
  0x6f   :  { %242 = vmatmul.f32.gmra.mxu0 %v575_v33 }
  0x70   :  { %449 = vmatpush.msra.mxu2 %v430_v39  ;;  %638 = vmatpush.msra.mxu3 %v430_v39 }
  0x72   :  { %450 = vmatpush.msra.mxu2 %v429_v42  ;;  %639 = vmatpush.msra.mxu3 %v429_v42 }
  0x77   :  { %245 = vmatmul.f32.gmra.mxu0 %v578_v38  ;;  %v118_v38 = vld [vmem:[#allocation6 + $0x48] sm:$0xff] }
  0x7f   :  { %248 = vmatmul.f32.gmra.mxu0 %v579_v43  ;;  %v428_v43 = vld [vmem:[#allocation11 + $0x30] sm:$0xff] }
  0x80   :  { %451 = vmatpush.msra.mxu2 %v428_v43  ;;  %640 = vmatpush.msra.mxu3 %v428_v43 }
  0x82   :  { %452 = vmatpush.msra.mxu2 %v427_v44  ;;  %641 = vmatpush.msra.mxu3 %v427_v44 }
  0x84   :  { %453 = vmatpush.msra.mxu2 %v426_v46  ;;  %642 = vmatpush.msra.mxu3 %v426_v46 }
  0x87   :  { %251 = vmatmul.f32.gmra.mxu0 %v582_v49  ;;  %v425_v49 = vld [vmem:[#allocation11 + $0x18] sm:$0xff] }
  0x88   :  { %454 = vmatpush.msra.mxu2 %v425_v49  ;;  %643 = vmatpush.msra.mxu3 %v425_v49 }
  0x8f   :  { %254 = vmatmul.f32.gmra.mxu0 %v583_v53  ;;  %v424_v53 = vld [vmem:[#allocation11 + $0x10] sm:$0xff] }
  0x90   :  { %455 = vmatpush.msra.mxu2 %v424_v53  ;;  %644 = vmatpush.msra.mxu3 %v424_v53 }
  0x92   :  { %456 = vmatpush.msra.mxu2 %v423_v54  ;;  %645 = vmatpush.msra.mxu3 %v423_v54 }
  0x94   :  { %457 = vmatpush.msra.mxu2 %v422_v55  ;;  %646 = vmatpush.msra.mxu3 %v422_v55 }
  0xb4   :  { %v222_v57 = vpop.f32.mrf.mxu0 }
  0xb5   :  { %v270_v58 = vadd.f32 %v222_v57, %v109_v56  ;;  %v657_v56 = vld [vmem:[%s922_s4] ss:$0 sm:$0xff] }
  0xb7   :  { %357 = vmatmul.f32.vlgmr.msra.gmra.mxu1 %v270_v58 }
  0xba   :  { %v258_v5 = vpop.f32.mrf.mxu3 }
  0xbb   :  { %v282_v6 = vadd.f32 %v258_v5, %v121_v4 }
  0xbc   :  { %v225_v60 = vpop.f32.mrf.mxu0 }
  0xbd   :  { %v271_v61 = vadd.f32 %v225_v60, %v110_v59  ;;  %393 = vmatmul.f32.vlgmr.msrb.gmra.mxu3 %v282_v6 }
  0xbf   :  { %360 = vmatmul.f32.gmra.mxu1 %v271_v61 }
  0xc2   :  { %v261_v11 = vpop.f32.mrf.mxu3 }
  0xc3   :  { %v283_v12 = vadd.f32 %v261_v11, %v122_v10 }
  0xc4   :  { %v228_v63 = vpop.f32.mrf.mxu0 }
  0xc5   :  { %v272_v0 = vadd.f32 %v228_v63, %v111_v62  ;;  %396 = vmatmul.f32.gmra.mxu3 %v283_v12 }
  0xc7   :  { %363 = vmatmul.f32.gmra.mxu1 %v272_v0 }
  0xca   :  { %v264_v17 = vpop.f32.mrf.mxu3 }
  0xcb   :  { %v284_v18 = vadd.f32 %v264_v17, %v123_v16 }
  0xcc   :  { %v231_v2 = vpop.f32.mrf.mxu0 }
  0xcd   :  { %v273_v3 = vadd.f32 %v231_v2, %v112_v1  ;;  %399 = vmatmul.f32.gmra.mxu3 %v284_v18 }
  0xcf   :  { %366 = vmatmul.f32.gmra.mxu1 %v273_v3 }
  0xd2   :  { %v267_v23 = vpop.f32.mrf.mxu3 }
  0xd3   :  { %v285_v24 = vadd.f32 %v267_v23, %v124_v22 }
  0xd4   :  { %v234_v8 = vpop.f32.mrf.mxu0 }
  0xd5   :  { %v274_v9 = vadd.f32 %v234_v8, %v113_v7  ;;  %402 = vmatmul.f32.gmra.mxu3 %v285_v24 }
  0xd7   :  { %369 = vmatmul.f32.gmra.mxu1 %v274_v9 }
  0xdc   :  { %v237_v14 = vpop.f32.mrf.mxu0 }
  0xdd   :  { %v275_v15 = vadd.f32 %v237_v14, %v114_v13 }
  0xdf   :  { %372 = vmatmul.f32.gmra.mxu1 %v275_v15 }
  0xe4   :  { %v240_v20 = vpop.f32.mrf.mxu0 }
  0xe5   :  { %v276_v21 = vadd.f32 %v240_v20, %v115_v19 }
  0xe7   :  { %375 = vmatmul.f32.gmra.mxu1 %v276_v21 }
  0xec   :  { %v243_v26 = vpop.f32.mrf.mxu0 }
  0xed   :  { %v277_v27 = vadd.f32 %v243_v26, %v116_v25 }
  0xef   :  { %378 = vmatmul.f32.gmra.mxu1 %v277_v27 }
  0xf4   :  { %v246_v33 = vpop.f32.mrf.mxu0 }
  0xf5   :  { %v278_v34 = vadd.f32 %v246_v33, %v117_v31 }
  0xf7   :  { %381 = vmatmul.f32.gmra.mxu1 %v278_v34 }
  0xfc   :  { %v249_v40 = vpop.f32.mrf.mxu0 }
  0xfd   :  { %v279_v41 = vadd.f32 %v249_v40, %v118_v38 }
  0xff   :  { %384 = vmatmul.f32.gmra.mxu1 %v279_v41  ;;  %v894_v41 = vld [vmem:[%s924_s6] ss:$0 sm:$0xff]  ;;  %s820_s6 = smov [#allocation12]  }
 0x100   :  { %s543_s28 = sshll.u32 %s820_s6, 4  ;;  %s544_s28 = int_to_ptr.vmem [resolvable:$true] %s543_s28 }
 0x104   :  { %v252_v47 = vpop.f32.mrf.mxu0 }
 0x105   :  { %v280_v48 = vadd.f32 %v252_v47, %v119_v45 }
 0x107   :  { %387 = vmatmul.f32.gmra.mxu1 %v280_v48 }
 0x10c   :  { %v255_v51 = vpop.f32.mrf.mxu0 }
 0x10d   :  { %v281_v52 = vadd.f32 %v255_v51, %v120_v50 }
 0x10f   :  { %390 = vmatmul.f32.gmra.mxu1 %v281_v52 }
 0x134   :  { %v358_v57 = vpop.f32.mrf.mxu1 }
 0x135   :  { %v359_v58 = vadd.f32 %v657_v56, %v358_v57 }
 0x137   :  { %v406_v59 = vmax.f32 %v359_v58, 0.0 }
 0x139   :  { %458 = vmatmul.f32.vlgmr.msra.gmra.mxu2 %v406_v59 }
 0x13c   :  { %v361_v60 = vpop.f32.mrf.mxu1 }
 0x13d   :  { %v362_v61 = vadd.f32 %v657_v56, %v361_v60 }
 0x13f   :  { %v407_v62 = vmax.f32 %v362_v61, 0.0 }
 0x140   :  { %v394_v6 = vpop.f32.mrf.mxu3 }
 0x141   :  { %461 = vmatmul.f32.gmra.mxu2 %v407_v62  ;;  %v395_v8 = vadd.f32 %v657_v56, %v394_v6 }
 0x143   :  { %v418_v10 = vmax.f32 %v395_v8, 0.0 }
 0x144   :  { %v364_v63 = vpop.f32.mrf.mxu1 }
 0x145   :  { %v365_v0 = vadd.f32 %v657_v56, %v364_v63  ;;  %494 = vmatmul.f32.vlgmr.msra.gmra.mxu3 %v418_v10 }
 0x147   :  { %v408_v1 = vmax.f32 %v365_v0, 0.0 }
 0x148   :  { %v397_v12 = vpop.f32.mrf.mxu3 }
 0x149   :  { %464 = vmatmul.f32.gmra.mxu2 %v408_v1  ;;  %v398_v14 = vadd.f32 %v657_v56, %v397_v12 }
 0x14b   :  { %v419_v16 = vmax.f32 %v398_v14, 0.0 }
 0x14c   :  { %v367_v2 = vpop.f32.mrf.mxu1 }
 0x14d   :  { %v368_v3 = vadd.f32 %v657_v56, %v367_v2  ;;  %497 = vmatmul.f32.gmra.mxu3 %v419_v16 }
 0x14f   :  { %v409_v4 = vmax.f32 %v368_v3, 0.0 }
 0x150   :  { %v400_v18 = vpop.f32.mrf.mxu3 }
 0x151   :  { %467 = vmatmul.f32.gmra.mxu2 %v409_v4  ;;  %v401_v20 = vadd.f32 %v657_v56, %v400_v18 }
 0x153   :  { %v420_v22 = vmax.f32 %v401_v20, 0.0 }
 0x154   :  { %v370_v5 = vpop.f32.mrf.mxu1 }
 0x155   :  { %v371_v7 = vadd.f32 %v657_v56, %v370_v5  ;;  %500 = vmatmul.f32.gmra.mxu3 %v420_v22 }
 0x157   :  { %v410_v9 = vmax.f32 %v371_v7, 0.0 }
 0x158   :  { %v403_v24 = vpop.f32.mrf.mxu3 }
 0x159   :  { %470 = vmatmul.f32.gmra.mxu2 %v410_v9  ;;  %v404_v26 = vadd.f32 %v657_v56, %v403_v24 }
 0x15b   :  { %v421_v28 = vmax.f32 %v404_v26, 0.0 }
 0x15c   :  { %v373_v11 = vpop.f32.mrf.mxu1 }
 0x15d   :  { %v374_v13 = vadd.f32 %v657_v56, %v373_v11  ;;  %503 = vmatmul.f32.gmra.mxu3 %v421_v28 }
 0x15f   :  { %v411_v15 = vmax.f32 %v374_v13, 0.0 }
 0x161   :  { %473 = vmatmul.f32.gmra.mxu2 %v411_v15 }
 0x164   :  { %v376_v17 = vpop.f32.mrf.mxu1 }
 0x165   :  { %v377_v19 = vadd.f32 %v657_v56, %v376_v17 }
 0x167   :  { %v412_v21 = vmax.f32 %v377_v19, 0.0 }
 0x169   :  { %476 = vmatmul.f32.gmra.mxu2 %v412_v21 }
 0x16c   :  { %v379_v23 = vpop.f32.mrf.mxu1 }
 0x16d   :  { %v380_v25 = vadd.f32 %v657_v56, %v379_v23 }
 0x16f   :  { %v413_v27 = vmax.f32 %v380_v25, 0.0 }
 0x171   :  { %479 = vmatmul.f32.gmra.mxu2 %v413_v27 }
 0x174   :  { %v382_v29 = vpop.f32.mrf.mxu1 }
 0x175   :  { %v383_v30 = vadd.f32 %v657_v56, %v382_v29 }
 0x177   :  { %v414_v31 = vmax.f32 %v383_v30, 0.0 }
 0x179   :  { %482 = vmatmul.f32.gmra.mxu2 %v414_v31 }
 0x17c   :  { %v385_v32 = vpop.f32.mrf.mxu1 }
 0x17d   :  { %v386_v33 = vadd.f32 %v657_v56, %v385_v32 }
 0x17f   :  { %v415_v34 = vmax.f32 %v386_v33, 0.0 }
 0x181   :  { %485 = vmatmul.f32.gmra.mxu2 %v415_v34 }
 0x184   :  { %v388_v35 = vpop.f32.mrf.mxu1 }
 0x185   :  { %v389_v36 = vadd.f32 %v657_v56, %v388_v35 }
 0x187   :  { %v416_v37 = vmax.f32 %v389_v36, 0.0 }
 0x189   :  { %488 = vmatmul.f32.gmra.mxu2 %v416_v37 }
 0x18c   :  { %v391_v38 = vpop.f32.mrf.mxu1 }
 0x18d   :  { %v392_v39 = vadd.f32 %v657_v56, %v391_v38 }
 0x18f   :  { %v417_v40 = vmax.f32 %v392_v39, 0.0 }
 0x191   :  { %491 = vmatmul.f32.gmra.mxu2 %v417_v40 }
 0x1bc   :  { %v459_v42 = vpop.f32.mrf.mxu2 }
 0x1bd   :  { %v460_v43 = vadd.f32 %v894_v41, %v459_v42 }
 0x1bf   :  { %v507_v44 = vmax.f32 %v460_v43, 0.0 }
 0x1c1   :  { %523 = vst [vmem:[#allocation12] sm:$0xff] %v507_v44 }
 0x1c4   :  { %v462_v45 = vpop.f32.mrf.mxu2 }
 0x1c5   :  { %v463_v46 = vadd.f32 %v894_v41, %v462_v45 }
 0x1c7   :  { %v508_v47 = vmax.f32 %v463_v46, 0.0 }
 0x1c8   :  { %v495_v55 = vpop.f32.mrf.mxu3 }
 0x1c9   :  { %524 = vst [vmem:[#allocation12 + $0x8] sm:$0xff] %v508_v47  ;;  %v496_v57 = vadd.f32 %v894_v41, %v495_v55 }
 0x1cb   :  { %v519_v59 = vmax.f32 %v496_v57, 0.0 }
 0x1cc   :  { %v465_v48 = vpop.f32.mrf.mxu2 }
 0x1cd   :  { %v466_v49 = vadd.f32 %v894_v41, %v465_v48  ;;  %535 = vst [vmem:[#allocation12 + $0x60] sm:$0xff] %v519_v59 }
 0x1cf   :  { %v509_v50 = vmax.f32 %v466_v49, 0.0 }
 0x1d0   :  { %v498_v61 = vpop.f32.mrf.mxu3 }
 0x1d1   :  { %525 = vst [vmem:[#allocation12 + $0x10] sm:$0xff] %v509_v50  ;;  %v499_v63 = vadd.f32 %v894_v41, %v498_v61 }
 0x1d3   :  { %v520_v1 = vmax.f32 %v499_v63, 0.0 }
 0x1d4   :  { %v468_v51 = vpop.f32.mrf.mxu2 }
 0x1d5   :  { %v469_v52 = vadd.f32 %v894_v41, %v468_v51  ;;  %536 = vst [vmem:[#allocation12 + $0x68] sm:$0xff] %v520_v1 }
 0x1d7   :  { %v510_v53 = vmax.f32 %v469_v52, 0.0 }
 0x1d8   :  { %v501_v3 = vpop.f32.mrf.mxu3 }
 0x1d9   :  { %526 = vst [vmem:[#allocation12 + $0x18] sm:$0xff] %v510_v53  ;;  %v502_v5 = vadd.f32 %v894_v41, %v501_v3 }
 0x1db   :  { %v521_v7 = vmax.f32 %v502_v5, 0.0 }
 0x1dc   :  { %v471_v54 = vpop.f32.mrf.mxu2 }
 0x1dd   :  { %v472_v56 = vadd.f32 %v894_v41, %v471_v54  ;;  %537 = vst [vmem:[#allocation12 + $0x70] sm:$0xff] %v521_v7 }
 0x1df   :  { %v511_v58 = vmax.f32 %v472_v56, 0.0 }
 0x1e0   :  { %v504_v9 = vpop.f32.mrf.mxu3 }
 0x1e1   :  { %527 = vst [vmem:[#allocation12 + $0x20] sm:$0xff] %v511_v58  ;;  %v505_v11 = vadd.f32 %v894_v41, %v504_v9 }
 0x1e3   :  { %v522_v13 = vmax.f32 %v505_v11, 0.0 }
 0x1e4   :  { %v474_v60 = vpop.f32.mrf.mxu2 }
 0x1e5   :  { %v475_v62 = vadd.f32 %v894_v41, %v474_v60  ;;  %538 = vst [vmem:[#allocation12 + $0x78] sm:$0xff] %v522_v13 }
 0x1e7   :  { %v512_v0 = vmax.f32 %v475_v62, 0.0 }
 0x1e9   :  { %528 = vst [vmem:[#allocation12 + $0x28] sm:$0xff] %v512_v0 }
 0x1ec   :  { %v477_v2 = vpop.f32.mrf.mxu2 }
 0x1ed   :  { %v478_v4 = vadd.f32 %v894_v41, %v477_v2 }
 0x1ef   :  { %v513_v6 = vmax.f32 %v478_v4, 0.0 }
 0x1f1   :  { %529 = vst [vmem:[#allocation12 + $0x30] sm:$0xff] %v513_v6 }
 0x1f4   :  { %v480_v8 = vpop.f32.mrf.mxu2 }
 0x1f5   :  { %v481_v10 = vadd.f32 %v894_v41, %v480_v8 }
 0x1f7   :  { %v514_v12 = vmax.f32 %v481_v10, 0.0 }
 0x1f9   :  { %530 = vst [vmem:[#allocation12 + $0x38] sm:$0xff] %v514_v12 }
 0x1fc   :  { %v483_v14 = vpop.f32.mrf.mxu2 }
 0x1fd   :  { %v484_v15 = vadd.f32 %v894_v41, %v483_v14 }
 0x1ff   :  { %v515_v16 = vmax.f32 %v484_v15, 0.0 }
 0x201   :  { %531 = vst [vmem:[#allocation12 + $0x40] sm:$0xff] %v515_v16 }
 0x204   :  { %v486_v17 = vpop.f32.mrf.mxu2 }
 0x205   :  { %v487_v18 = vadd.f32 %v894_v41, %v486_v17 }
 0x207   :  { %v516_v19 = vmax.f32 %v487_v18, 0.0 }
 0x209   :  { %532 = vst [vmem:[#allocation12 + $0x48] sm:$0xff] %v516_v19 }
 0x20c   :  { %v489_v20 = vpop.f32.mrf.mxu2 }
 0x20d   :  { %v490_v21 = vadd.f32 %v894_v41, %v489_v20 }
 0x20f   :  { %v517_v22 = vmax.f32 %v490_v21, 0.0 }
 0x211   :  { %533 = vst [vmem:[#allocation12 + $0x50] sm:$0xff] %v517_v22 }
 0x214   :  { %v492_v23 = vpop.f32.mrf.mxu2 }
 0x215   :  { %v493_v24 = vadd.f32 %v894_v41, %v492_v23 }
 0x217   :  { %v518_v25 = vmax.f32 %v493_v24, 0.0 }
 0x219   :  { %534 = vst [vmem:[#allocation12 + $0x58] sm:$0xff] %v518_v25 }
 0x21a   :  { %551 = dma.vmem_to_hbm [thread:$0]  %s544_s28, 2048, %s546_s8, [#allocation5], %s812_s9, %s812_s9, %s813_s10  }
 0x21b   :  { %809 = dma.done.wait [#allocation5], 2048  }
 0x21c   :  { %810 = vsyncadd [#allocation5], 4294965248 }
 0x21d   :  { %556 = vsyncpa [#allocation4], 1 }
 0x21e   :  { %557 = vsyncpa [#allocation7], 1 }
 0x21f   :  { %558 = vsyncpa [#allocation10], 1 }
 0x220   :  { %559 = vsyncpa [#allocation5], 1 }

</bundles_post_ra>
